<compile_context>
chip_gen: v7x
topology: tpu7x:2x2x1
jax: 0.10.0
libtpu: 0.0.40
codegen_flags: <defaults>
</compile_context>

<pallas_src>
import jax
import jax.numpy as jnp
from jax.experimental import pallas as pl
from jax.experimental.pallas import tpu as pltpu


def _round_up(x, m):
    return (x + m - 1) // m * m


def _largest_mult8_divisor(n, cap):
    """Largest multiple-of-8 divisor of n (n % 8 == 0) that is <= cap."""
    m = n // 8
    best = 8
    i = 1
    while i * i <= m:
        if m % i == 0:
            for d in (i, m // i):
                t = 8 * d
                if best < t <= cap:
                    best = t
        i += 1
    return best


def _mlp_kernel(ls_ref, lns_ref,
                w1a_ref, w1b_ref, b1_ref,
                w2_ref, b2_ref,
                w3_ref, b3_ref,
                w4_ref, b4_ref,
                o_ref):
    """One batch tile of the 4-layer MLP; the concat is fused as two matmuls.

    Weights are bf16 (stored that way), activations are cast to bf16 right
    before each dot, accumulation is f32 (preferred_element_type).
    """
    bf16 = jnp.bfloat16
    f32 = jnp.float32

    # Layer 1: cat([ls, lns]) @ W1 == ls @ W1a + lns @ W1b
    h = (jnp.dot(ls_ref[...].astype(bf16), w1a_ref[...], preferred_element_type=f32)
         + jnp.dot(lns_ref[...].astype(bf16), w1b_ref[...], preferred_element_type=f32)
         + b1_ref[...])
    h = jnp.maximum(h, 0.0)

    h = jnp.dot(h.astype(bf16), w2_ref[...], preferred_element_type=f32) + b2_ref[...]
    h = jnp.maximum(h, 0.0)

    h = jnp.dot(h.astype(bf16), w3_ref[...], preferred_element_type=f32) + b3_ref[...]
    h = jnp.maximum(h, 0.0)

    out = jnp.dot(h.astype(bf16), w4_ref[...], preferred_element_type=f32) + b4_ref[...]
    o_ref[...] = out.astype(o_ref.dtype)


def action_network_forward(ls, lns, kparams, action_dim, *,
                           batch_tile=1024,
                           out_dtype=jnp.float32,
                           return_padded=False):
    """ls, lns: [B, latent_dim] float32; kparams from pad_params().

    Returns [B, action_dim] in `out_dtype` (default f32).  Pass
    `out_dtype=jnp.bfloat16` to halve output HBM writeback, and
    `return_padded=True` to get the lane-dense [Bp, A_pad] array directly
    (rows >= B and lanes >= action_dim are padding) and skip the wrapper slice.
    """
    B, L = ls.shape
    A_pad = kparams["w4"].shape[1]
    H_pad = kparams["w2"].shape[0]

    # ---- batch tiling -------------------------------------------------------
    B8 = _round_up(B, 8)                       # f32 sublane multiple
    TB = min(batch_tile, B8)

    # v7x: if a large batch fits in a single tile, split it into >=2 grid steps
    # so the "parallel" batch axis shards across both TensorCores.  No effect
    # on v5e/v6e (single TC); skipped for small batches (per-step overhead).
    if B8 <= batch_tile and B8 >= 512:
        TB = _round_up(pl.cdiv(B8, 2), 8)

    # Avoid the full jnp.pad copy of the inputs when B8 % TB != 0: prefer a
    # reasonably large multiple-of-8 divisor of B8 so TB divides B8 exactly.
    if B8 % TB != 0:
        d = _largest_mult8_divisor(B8, TB)
        if d >= max(128, TB // 4):
            TB = d

    Bp = _round_up(B8, TB)
    if Bp != B:
        # Padded rows see zero inputs -> bias-only garbage rows, sliced off below.
        ls = jnp.pad(ls, ((0, Bp - B), (0, 0)))
        lns = jnp.pad(lns, ((0, Bp - B), (0, 0)))

    grid = (Bp // TB,)

    def tiled(feat):
        return pl.BlockSpec((TB, feat), lambda i: (i, 0),
                            memory_space=pltpu.MemorySpace.VMEM)

    def resident(a):
        # Weights/biases: same block every grid step -> VMEM-resident.
        return pl.BlockSpec(a.shape, lambda i: (0, 0),
                            memory_space=pltpu.MemorySpace.VMEM)

    flops = 2 * Bp * (2 * L * H_pad + H_pad * H_pad + H_pad * 256 + 256 * A_pad)
    weight_bytes = sum(int(v.size) * v.dtype.itemsize for v in kparams.values())
    bytes_accessed = (ls.dtype.itemsize * Bp * 2 * L
                      + jnp.dtype(out_dtype).itemsize * Bp * A_pad
                      + weight_bytes)

    out = pl.pallas_call(
        _mlp_kernel,
        out_shape=jax.ShapeDtypeStruct((Bp, A_pad), out_dtype),
        grid=grid,
        in_specs=[
            tiled(L), tiled(L),
            resident(kparams["w1a"]), resident(kparams["w1b"]), resident(kparams["b1"]),
            resident(kparams["w2"]), resident(kparams["b2"]),
            resident(kparams["w3"]), resident(kparams["b3"]),
            resident(kparams["w4"]), resident(kparams["b4"]),
        ],
        out_specs=tiled(A_pad),
        compiler_params=pltpu.CompilerParams(
            dimension_semantics=("parallel",),
            # v5e's default scoped VMEM is 16 MiB; only needed for very fat tiles.
            vmem_limit_bytes=(48 * 1024 * 1024 if TB > 1024 else None)),
        cost_estimate=pl.CostEstimate(
            flops=flops, transcendentals=0, bytes_accessed=bytes_accessed),
    )(ls, lns,
      kparams["w1a"], kparams["w1b"], kparams["b1"],
      kparams["w2"], kparams["b2"],
      kparams["w3"], kparams["b3"],
      kparams["w4"], kparams["b4"])

    if return_padded:
        return out                       # [Bp, A_pad], padding documented above
    return out[:B, :action_dim]


def init_params(key, latent_dim, action_dim):
    """Deterministic init mimicking PyTorch's default Linear init
    (uniform(-1/sqrt(fan_in), 1/sqrt(fan_in))).  Weights stored as [in, out]."""
    dims = [(latent_dim * 2, latent_dim),
            (latent_dim, latent_dim),
            (latent_dim, 256),
            (256, action_dim)]
    params = {}
    for i, (fan_in, fan_out) in enumerate(dims, start=1):
        key, kw, kb = jax.random.split(key, 3)
        bound = 1.0 / jnp.sqrt(jnp.float32(fan_in))
        params[f"w{i}"] = jax.random.uniform(
            kw, (fan_in, fan_out), jnp.float32, -bound, bound)
        params[f"b{i}"] = jax.random.uniform(
            kb, (1, fan_out), jnp.float32, -bound, bound)
    return params


def pad_params(params, latent_dim, action_dim):
    """Split w1 for the fused concat, zero-pad output feature dims to multiples
    of 128 (lane-dense matmul outputs / stores), and store weights as bf16
    (MXU-native; no per-step cast).  Biases stay f32 (added after the f32
    accumulation).  Zero padding is exact through bias + ReLU."""
    H = _round_up(latent_dim, 128)
    A = _round_up(action_dim, 128)
    bf16 = jnp.bfloat16
    f32 = jnp.float32

    def pad_to(a, rows, cols, dtype):
        a = jnp.pad(a, ((0, rows - a.shape[0]), (0, cols - a.shape[1])))
        return a.astype(dtype)

    w1a = params["w1"][:latent_dim]        # ls half
    w1b = params["w1"][latent_dim:]        # lns half
    return {
        "w1a": pad_to(w1a, latent_dim, H, bf16),
        "w1b": pad_to(w1b, latent_dim, H, bf16),
        "b1":  pad_to(params["b1"], 1, H, f32),
        "w2":  pad_to(params["w2"], H, H, bf16),
        "b2":  pad_to(params["b2"], 1, H, f32),
        "w3":  pad_to(params["w3"], H, 256, bf16),
        "b3":  params["b3"].astype(f32),
        "w4":  pad_to(params["w4"], 256, A, bf16),
        "b4":  pad_to(params["b4"], 1, A, f32),
    }


def _reference_forward_f32(ls, lns, params):
    x = jnp.concatenate([ls, lns], axis=-1)
    h = jnp.maximum(x @ params["w1"] + params["b1"], 0.0)
    h = jnp.maximum(h @ params["w2"] + params["b2"], 0.0)
    h = jnp.maximum(h @ params["w3"] + params["b3"], 0.0)
    return h @ params["w4"] + params["b4"]


def _reference_forward_bf16(ls, lns, params):
    """Pure-JAX replica of the kernel numerics: bf16 operands, f32 accumulate."""
    bf16 = jnp.bfloat16
    f32 = jnp.float32

    def mm(x, w):
        return jnp.dot(x.astype(bf16), w.astype(bf16), preferred_element_type=f32)

    L = ls.shape[-1]
    h = mm(ls, params["w1"][:L]) + mm(lns, params["w1"][L:]) + params["b1"]
    h = jnp.maximum(h, 0.0)
    h = jnp.maximum(mm(h, params["w2"]) + params["b2"], 0.0)
    h = jnp.maximum(mm(h, params["w3"]) + params["b3"], 0.0)
    return mm(h, params["w4"]) + params["b4"]


if __name__ == "__main__":
    latent_dim = 32
    action_dim = 8
    batch = 4   # tiny demo batch; in practice batch across envs/timesteps first

    key = jax.random.PRNGKey(0)
    key, k_ls, k_lns = jax.random.split(key, 3)
    ls = jax.random.normal(k_ls, (batch, latent_dim), jnp.float32)
    lns = jax.random.normal(k_lns, (batch, latent_dim), jnp.float32)

    params = init_params(key, latent_dim, action_dim)
    kparams = pad_params(params, latent_dim, action_dim)

    out = action_network_forward(ls, lns, kparams, action_dim)
    out = jax.block_until_ready(out)
    assert out.shape == (batch, action_dim)

    # Tight check against a pure-JAX replica of the bf16-operand kernel math,
    # loose check against the full-f32 reference (bf16 operand rounding).
    ref_bf16 = _reference_forward_bf16(ls, lns, params)
    ref_f32 = _reference_forward_f32(ls, lns, params)
    assert jnp.allclose(out, ref_bf16, atol=2e-3, rtol=2e-3), "mismatch vs. bf16 reference"
    assert jnp.allclose(out, ref_f32, atol=5e-2, rtol=5e-2), "mismatch vs. f32 reference"

    print("KERNEL_OK")
</pallas_src>

<mosaic_0001>
module attributes {stable_mosaic.version = 11 : i64} {
  func.func @_mlp_kernel(%arg0: i32, %arg1: memref<8x32xf32, #tpu.memory_space<vmem>>, %arg2: memref<8x32xf32, #tpu.memory_space<vmem>>, %arg3: memref<32x128xbf16, #tpu.memory_space<vmem>>, %arg4: memref<32x128xbf16, #tpu.memory_space<vmem>>, %arg5: memref<1x128xf32, #tpu.memory_space<vmem>>, %arg6: memref<128x128xbf16, #tpu.memory_space<vmem>>, %arg7: memref<1x128xf32, #tpu.memory_space<vmem>>, %arg8: memref<128x256xbf16, #tpu.memory_space<vmem>>, %arg9: memref<1x256xf32, #tpu.memory_space<vmem>>, %arg10: memref<256x128xbf16, #tpu.memory_space<vmem>>, %arg11: memref<1x128xf32, #tpu.memory_space<vmem>>, %arg12: memref<8x128xf32, #tpu.memory_space<vmem>>) attributes {dimension_semantics = [#tpu.dimension_semantics<parallel>], iteration_bounds = array<i64: 1>, scalar_prefetch = 0 : i64, scratch_operands = 0 : i64, tpu.core_type = #tpu.core_type<tc>, window_params = [{transform_indices = @transform_0, window_bounds = array<i64: 8, 32>}, {transform_indices = @transform_1, window_bounds = array<i64: 8, 32>}, {pipeline_mode = #tpu.pipeline_mode<synchronous>, transform_indices = @transform_2, window_bounds = array<i64: 32, 128>}, {pipeline_mode = #tpu.pipeline_mode<synchronous>, transform_indices = @transform_3, window_bounds = array<i64: 32, 128>}, {pipeline_mode = #tpu.pipeline_mode<synchronous>, transform_indices = @transform_4, window_bounds = array<i64: 1, 128>}, {pipeline_mode = #tpu.pipeline_mode<synchronous>, transform_indices = @transform_5, window_bounds = array<i64: 128, 128>}, {pipeline_mode = #tpu.pipeline_mode<synchronous>, transform_indices = @transform_6, window_bounds = array<i64: 1, 128>}, {pipeline_mode = #tpu.pipeline_mode<synchronous>, transform_indices = @transform_7, window_bounds = array<i64: 128, 256>}, {pipeline_mode = #tpu.pipeline_mode<synchronous>, transform_indices = @transform_8, window_bounds = array<i64: 1, 256>}, {pipeline_mode = #tpu.pipeline_mode<synchronous>, transform_indices = @transform_9, window_bounds = array<i64: 256, 128>}, {pipeline_mode = #tpu.pipeline_mode<synchronous>, transform_indices = @transform_10, window_bounds = array<i64: 1, 128>}, {transform_indices = @transform_11, window_bounds = array<i64: 8, 128>}]} {
    %c0 = arith.constant 0 : index
    %c0_0 = arith.constant 0 : index
    %0 = vector.load %arg1[%c0, %c0_0] : memref<8x32xf32, #tpu.memory_space<vmem>>, vector<8x32xf32>
    %1 = arith.truncf %0 : vector<8x32xf32> to vector<8x32xbf16>
    %c0_1 = arith.constant 0 : index
    %c0_2 = arith.constant 0 : index
    %2 = vector.load %arg3[%c0_1, %c0_2] : memref<32x128xbf16, #tpu.memory_space<vmem>>, vector<32x128xbf16>
    %cst = arith.constant dense<0.000000e+00> : vector<8x128xf32>
    %3 = tpu.matmul %1, %2, %cst {dimension_numbers = #tpu.dot_dimension_numbers<[1], [0], [0], [1], [0, 0, 1, 1], [], []>} : vector<8x32xbf16>, vector<32x128xbf16>, vector<8x128xf32> -> vector<8x128xf32>
    %c0_3 = arith.constant 0 : index
    %c0_4 = arith.constant 0 : index
    %4 = vector.load %arg2[%c0_3, %c0_4] : memref<8x32xf32, #tpu.memory_space<vmem>>, vector<8x32xf32>
    %5 = arith.truncf %4 : vector<8x32xf32> to vector<8x32xbf16>
    %c0_5 = arith.constant 0 : index
    %c0_6 = arith.constant 0 : index
    %6 = vector.load %arg4[%c0_5, %c0_6] : memref<32x128xbf16, #tpu.memory_space<vmem>>, vector<32x128xbf16>
    %cst_7 = arith.constant dense<0.000000e+00> : vector<8x128xf32>
    %7 = tpu.matmul %5, %6, %cst_7 {dimension_numbers = #tpu.dot_dimension_numbers<[1], [0], [0], [1], [0, 0, 1, 1], [], []>} : vector<8x32xbf16>, vector<32x128xbf16>, vector<8x128xf32> -> vector<8x128xf32>
    %8 = arith.addf %3, %7 : vector<8x128xf32>
    %c0_8 = arith.constant 0 : index
    %c0_9 = arith.constant 0 : index
    %9 = vector.load %arg5[%c0_8, %c0_9] : memref<1x128xf32, #tpu.memory_space<vmem>>, vector<1x128xf32>
    %10 = vector.broadcast %9 : vector<1x128xf32> to vector<8x128xf32>
    %11 = arith.addf %8, %10 : vector<8x128xf32>
    %cst_10 = arith.constant 0.000000e+00 : f32
    %12 = vector.broadcast %cst_10 : f32 to vector<8x128xf32>
    %13 = arith.maximumf %11, %12 : vector<8x128xf32>
    %14 = arith.truncf %13 : vector<8x128xf32> to vector<8x128xbf16>
    %c0_11 = arith.constant 0 : index
    %c0_12 = arith.constant 0 : index
    %15 = vector.load %arg6[%c0_11, %c0_12] : memref<128x128xbf16, #tpu.memory_space<vmem>>, vector<128x128xbf16>
    %cst_13 = arith.constant dense<0.000000e+00> : vector<8x128xf32>
    %16 = tpu.matmul %14, %15, %cst_13 {dimension_numbers = #tpu.dot_dimension_numbers<[1], [0], [0], [1], [0, 0, 1, 1], [], []>} : vector<8x128xbf16>, vector<128x128xbf16>, vector<8x128xf32> -> vector<8x128xf32>
    %c0_14 = arith.constant 0 : index
    %c0_15 = arith.constant 0 : index
    %17 = vector.load %arg7[%c0_14, %c0_15] : memref<1x128xf32, #tpu.memory_space<vmem>>, vector<1x128xf32>
    %18 = vector.broadcast %17 : vector<1x128xf32> to vector<8x128xf32>
    %19 = arith.addf %16, %18 : vector<8x128xf32>
    %cst_16 = arith.constant 0.000000e+00 : f32
    %20 = vector.broadcast %cst_16 : f32 to vector<8x128xf32>
    %21 = arith.maximumf %19, %20 : vector<8x128xf32>
    %22 = arith.truncf %21 : vector<8x128xf32> to vector<8x128xbf16>
    %c0_17 = arith.constant 0 : index
    %c0_18 = arith.constant 0 : index
    %23 = vector.load %arg8[%c0_17, %c0_18] : memref<128x256xbf16, #tpu.memory_space<vmem>>, vector<128x256xbf16>
    %cst_19 = arith.constant dense<0.000000e+00> : vector<8x256xf32>
    %24 = tpu.matmul %22, %23, %cst_19 {dimension_numbers = #tpu.dot_dimension_numbers<[1], [0], [0], [1], [0, 0, 1, 1], [], []>} : vector<8x128xbf16>, vector<128x256xbf16>, vector<8x256xf32> -> vector<8x256xf32>
    %c0_20 = arith.constant 0 : index
    %c0_21 = arith.constant 0 : index
    %25 = vector.load %arg9[%c0_20, %c0_21] : memref<1x256xf32, #tpu.memory_space<vmem>>, vector<1x256xf32>
    %26 = vector.broadcast %25 : vector<1x256xf32> to vector<8x256xf32>
    %27 = arith.addf %24, %26 : vector<8x256xf32>
    %cst_22 = arith.constant 0.000000e+00 : f32
    %28 = vector.broadcast %cst_22 : f32 to vector<8x256xf32>
    %29 = arith.maximumf %27, %28 : vector<8x256xf32>
    %30 = arith.truncf %29 : vector<8x256xf32> to vector<8x256xbf16>
    %c0_23 = arith.constant 0 : index
    %c0_24 = arith.constant 0 : index
    %31 = vector.load %arg10[%c0_23, %c0_24] : memref<256x128xbf16, #tpu.memory_space<vmem>>, vector<256x128xbf16>
    %cst_25 = arith.constant dense<0.000000e+00> : vector<8x128xf32>
    %32 = tpu.matmul %30, %31, %cst_25 {dimension_numbers = #tpu.dot_dimension_numbers<[1], [0], [0], [1], [0, 0, 1, 1], [], []>} : vector<8x256xbf16>, vector<256x128xbf16>, vector<8x128xf32> -> vector<8x128xf32>
    %c0_26 = arith.constant 0 : index
    %c0_27 = arith.constant 0 : index
    %33 = vector.load %arg11[%c0_26, %c0_27] : memref<1x128xf32, #tpu.memory_space<vmem>>, vector<1x128xf32>
    %34 = vector.broadcast %33 : vector<1x128xf32> to vector<8x128xf32>
    %35 = arith.addf %32, %34 : vector<8x128xf32>
    %c0_28 = arith.constant 0 : index
    %c0_29 = arith.constant 0 : index
    %36 = vector.load %arg12[%c0_28, %c0_29] : memref<8x128xf32, #tpu.memory_space<vmem>>, vector<8x128xf32>
    tpu.vector_store %arg12[%c0_28, %c0_29], %35 {strides = array<i32>} : memref<8x128xf32, #tpu.memory_space<vmem>>, vector<8x128xf32>,
    return
  }
  func.func @transform_0(%arg0: i32) -> (i32, i32) {
    %c0_i32 = arith.constant 0 : i32
    %c0_i32_0 = arith.constant 0 : i32
    return %arg0, %c0_i32 : i32, i32
  }
  func.func @transform_1(%arg0: i32) -> (i32, i32) {
    %c0_i32 = arith.constant 0 : i32
    %c0_i32_0 = arith.constant 0 : i32
    return %arg0, %c0_i32 : i32, i32
  }
  func.func @transform_2(%arg0: i32) -> (i32, i32) {
    %c0_i32 = arith.constant 0 : i32
    %c0_i32_0 = arith.constant 0 : i32
    %c0_i32_1 = arith.constant 0 : i32
    return %c0_i32, %c0_i32_0 : i32, i32
  }
  func.func @transform_3(%arg0: i32) -> (i32, i32) {
    %c0_i32 = arith.constant 0 : i32
    %c0_i32_0 = arith.constant 0 : i32
    %c0_i32_1 = arith.constant 0 : i32
    return %c0_i32, %c0_i32_0 : i32, i32
  }
  func.func @transform_4(%arg0: i32) -> (i32, i32) {
    %c0_i32 = arith.constant 0 : i32
    %c0_i32_0 = arith.constant 0 : i32
    %c0_i32_1 = arith.constant 0 : i32
    return %c0_i32, %c0_i32_0 : i32, i32
  }
  func.func @transform_5(%arg0: i32) -> (i32, i32) {
    %c0_i32 = arith.constant 0 : i32
    %c0_i32_0 = arith.constant 0 : i32
    %c0_i32_1 = arith.constant 0 : i32
    return %c0_i32, %c0_i32_0 : i32, i32
  }
  func.func @transform_6(%arg0: i32) -> (i32, i32) {
    %c0_i32 = arith.constant 0 : i32
    %c0_i32_0 = arith.constant 0 : i32
    %c0_i32_1 = arith.constant 0 : i32
    return %c0_i32, %c0_i32_0 : i32, i32
  }
  func.func @transform_7(%arg0: i32) -> (i32, i32) {
    %c0_i32 = arith.constant 0 : i32
    %c0_i32_0 = arith.constant 0 : i32
    %c0_i32_1 = arith.constant 0 : i32
    return %c0_i32, %c0_i32_0 : i32, i32
  }
  func.func @transform_8(%arg0: i32) -> (i32, i32) {
    %c0_i32 = arith.constant 0 : i32
    %c0_i32_0 = arith.constant 0 : i32
    %c0_i32_1 = arith.constant 0 : i32
    return %c0_i32, %c0_i32_0 : i32, i32
  }
  func.func @transform_9(%arg0: i32) -> (i32, i32) {
    %c0_i32 = arith.constant 0 : i32
    %c0_i32_0 = arith.constant 0 : i32
    %c0_i32_1 = arith.constant 0 : i32
    return %c0_i32, %c0_i32_0 : i32, i32
  }
  func.func @transform_10(%arg0: i32) -> (i32, i32) {
    %c0_i32 = arith.constant 0 : i32
    %c0_i32_0 = arith.constant 0 : i32
    %c0_i32_1 = arith.constant 0 : i32
    return %c0_i32, %c0_i32_0 : i32, i32
  }
  func.func @transform_11(%arg0: i32) -> (i32, i32) {
    %c0_i32 = arith.constant 0 : i32
    %c0_i32_0 = arith.constant 0 : i32
    return %arg0, %c0_i32 : i32, i32
  }
}

</mosaic_0001>

<bundles_post_ra>
// kernel: tpu_custom_call.1
= control target key start
LH: loop header
LB: loop body
LE: loop exit
PB: predicated region body
PF: predicated region fallthrough
CT: control target
= control target key end

     0   :  { %16 = vsyncpa [#allocation3], 0  ;;  %s1299_s0 = inlined_call_operand.hbm [shape: f32[8,32], index: 0, kind: input, shape index: {}]   ;;  %s1300_s1 = inlined_call_operand.hbm [shape: f32[8,32], index: 1, kind: input, shape index: {}]   ;;  %s1301_s2 = inlined_call_operand.hbm [shape: bf16[32,128], index: 2, kind: input, shape index: {}]   ;;  %s1302_s3 = inlined_call_operand.hbm [shape: bf16[32,128], index: 3, kind: input, shape index: {}]   ;;  %s1303_s4 = inlined_call_operand.vmem [shape: f32[1,128], index: 4, kind: input, shape index: {}]   ;;  %s1304_s5 = inlined_call_operand.hbm [shape: bf16[128,128], index: 5, kind: input, shape index: {}]   ;;  %s1305_s6 = inlined_call_operand.vmem [shape: f32[1,128], index: 6, kind: input, shape index: {}]   ;;  %s1306_s7 = inlined_call_operand.hbm [shape: bf16[128,256], index: 7, kind: input, shape index: {}]   ;;  %s1307_s8 = inlined_call_operand.vmem [shape: f32[1,256], index: 8, kind: input, shape index: {}]   ;;  %s1308_s9 = inlined_call_operand.hbm [shape: bf16[256,128], index: 9, kind: input, shape index: {}]   ;;  %s1309_s10 = inlined_call_operand.vmem [shape: f32[1,128], index: 10, kind: input, shape index: {}]   ;;  %s1310_s11 = inlined_call_operand.hbm [shape: f32[8,128], index: 11, kind: output, shape index: {}]  }
   0x1   :  { %17 = vsyncpa [#allocation6], 0 }
   0x2   :  { %18 = vsyncpa [#allocation9], 0 }
   0x3   :  { %19 = vsyncpa [#allocation12], 0 }
   0x4   :  { %20 = vsyncpa [#allocation4], 0  ;;  %s1099_s17 = smov [#allocation5]   ;;  %s913_s21 = scalar_lea.hbm %s1300_s1, 128 }
   0x5   :  { %s37_s18 = sshll.u32 %s1099_s17, 4  ;;  %p914_p0 = scmp.ne.s32.totalorder %s1300_s1, %s913_s21  ;;  %s38_s18 = int_to_ptr.vmem [resolvable:$true] %s37_s18 }
   0x6   :  { %p917_p1 = scmp.lt.u32.totalorder %s913_s21, %s1300_s1 }
   0x8   :  { %p919_p2 = pnand %p917_p1, %p914_p0 }
   0xa   :  { %922 = shalt.err (!%p919_p2)
}
   0xb   :  { %s923_s26 = scalar_lea.vmem %s38_s18, 128  ;;  %p928_p4 = scmp.lt.s32.totalorder %s38_s18, %s38_s18 }
   0xc   :  { %p924_p3 = scmp.ne.s32.totalorder %s38_s18, %s923_s26  ;;  %p929_p5 = scmp.lt.s32.totalorder %s923_s26, %s923_s26 }
   0xe   :  { %p930_p6 = por %p929_p5, %p928_p4 }
  0x10   :  { %p931_p7 = pnand %p930_p6, %p924_p3 }
  0x12   :  { %934 = shalt.err (!%p931_p7)
}
  0x13   :  { %40 = dma.hbm_to_vmem [thread:$0]  %s1300_s1, 128, %s38_s18, [#allocation6]  }
  0x14   :  { %s1100_s29 = smov [#allocation8]   ;;  %s1101_s12 = smov [#allocation11]  }
  0x15   :  { %s58_s30 = sshll.u32 %s1100_s29, 4  ;;  %s86_s13 = sshll.u32 %s1101_s12, 4  ;;  %s59_s30 = int_to_ptr.vmem [resolvable:$true] %s58_s30  ;;  %s87_s13 = int_to_ptr.vmem [resolvable:$true] %s86_s13 }
  0x16   :  { %s935_s16 = scalar_lea.hbm %s1302_s3, 256 }
  0x17   :  { %p936_p8 = scmp.ne.s32.totalorder %s1302_s3, %s935_s16  ;;  %p939_p9 = scmp.lt.u32.totalorder %s935_s16, %s1302_s3 }
  0x19   :  { %p941_p10 = pnand %p939_p9, %p936_p8 }
  0x1b   :  { %944 = shalt.err (!%p941_p10)
}
  0x1c   :  { %s945_s1 = scalar_lea.vmem %s59_s30, 256  ;;  %p950_p12 = scmp.lt.s32.totalorder %s59_s30, %s59_s30 }
  0x1d   :  { %p946_p11 = scmp.ne.s32.totalorder %s59_s30, %s945_s1  ;;  %p951_p13 = scmp.lt.s32.totalorder %s945_s1, %s945_s1 }
  0x1f   :  { %p952_p0 = por %p951_p13, %p950_p12 }
  0x21   :  { %p953_p1 = pnand %p952_p0, %p946_p11 }
  0x23   :  { %956 = shalt.err (!%p953_p1)
}
  0x24   :  { %s1102_s18 = smov 64   ;;  %s1103_s22 = smov 4  }
  0x25   :  { %64 = dma.hbm_to_vmem [thread:$0]  %s1302_s3, 256, %s59_s30, [#allocation9], %s1102_s18, %s1102_s18, %s1103_s22  }
  0x26   :  { %s957_s27 = scalar_lea.hbm %s1306_s7, 2048 }
  0x27   :  { %p958_p2 = scmp.ne.s32.totalorder %s1306_s7, %s957_s27  ;;  %p961_p3 = scmp.lt.u32.totalorder %s957_s27, %s1306_s7 }
  0x29   :  { %p963_p4 = pnand %p961_p3, %p958_p2 }
  0x2b   :  { %966 = shalt.err (!%p963_p4)
}
  0x2c   :  { %s967_s15 = scalar_lea.vmem %s87_s13, 2048  ;;  %p972_p6 = scmp.lt.s32.totalorder %s87_s13, %s87_s13 }
  0x2d   :  { %p968_p5 = scmp.ne.s32.totalorder %s87_s13, %s967_s15  ;;  %p973_p7 = scmp.lt.s32.totalorder %s967_s15, %s967_s15 }
  0x2f   :  { %p974_p8 = por %p973_p7, %p972_p6 }
  0x31   :  { %p975_p9 = pnand %p974_p8, %p968_p5 }
  0x33   :  { %978 = shalt.err (!%p975_p9)
}
  0x34   :  { %s1104_s3 = smov 128   ;;  %s1105_s30 = smov 8  }
  0x35   :  { %92 = dma.hbm_to_vmem [thread:$0]  %s1306_s7, 2048, %s87_s13, [#allocation12], %s1104_s3, %s1104_s3, %s1105_s30  }
  0x36   :  { %s1106_s19 = smov [#allocation2]   ;;  %s1107_s21 = smov [#allocation7]  }
  0x37   :  { %s27_s20 = sshll.u32 %s1106_s19, 4  ;;  %s46_s1 = sshll.u32 %s1107_s21, 4  ;;  %s28_s20 = int_to_ptr.vmem [resolvable:$true] %s27_s20  ;;  %s47_s1 = int_to_ptr.vmem [resolvable:$true] %s46_s1 }
  0x38   :  { %s979_s25 = scalar_lea.hbm %s1299_s0, 128 }
  0x39   :  { %p980_p10 = scmp.ne.s32.totalorder %s1299_s0, %s979_s25  ;;  %p983_p11 = scmp.lt.u32.totalorder %s979_s25, %s1299_s0 }
  0x3b   :  { %p985_p12 = pnand %p983_p11, %p980_p10 }
  0x3d   :  { %988 = shalt.err (!%p985_p12)
}
  0x3e   :  { %s989_s7 = scalar_lea.vmem %s28_s20, 128  ;;  %p994_p0 = scmp.lt.s32.totalorder %s28_s20, %s28_s20 }
  0x3f   :  { %p990_p13 = scmp.ne.s32.totalorder %s28_s20, %s989_s7  ;;  %p995_p1 = scmp.lt.s32.totalorder %s989_s7, %s989_s7 }
  0x41   :  { %p996_p2 = por %p995_p1, %p994_p0 }
  0x43   :  { %p997_p3 = pnand %p996_p2, %p990_p13 }
  0x45   :  { %1000 = shalt.err (!%p997_p3)
}
  0x46   :  { %30 = dma.hbm_to_vmem [thread:$0]  %s1299_s0, 128, %s28_s20, [#allocation3]  }
  0x47   :  { %s1001_s3 = scalar_lea.hbm %s1301_s2, 256 }
  0x48   :  { %p1002_p4 = scmp.ne.s32.totalorder %s1301_s2, %s1001_s3  ;;  %p1005_p5 = scmp.lt.u32.totalorder %s1001_s3, %s1301_s2 }
  0x4a   :  { %p1007_p6 = pnand %p1005_p5, %p1002_p4 }
  0x4c   :  { %1010 = shalt.err (!%p1007_p6)
}
  0x4d   :  { %s1011_s21 = scalar_lea.vmem %s47_s1, 256  ;;  %p1016_p8 = scmp.lt.s32.totalorder %s47_s1, %s47_s1 }
  0x4e   :  { %p1012_p7 = scmp.ne.s32.totalorder %s47_s1, %s1011_s21  ;;  %p1017_p9 = scmp.lt.s32.totalorder %s1011_s21, %s1011_s21 }
  0x50   :  { %p1018_p10 = por %p1017_p9, %p1016_p8 }
  0x52   :  { %p1019_p11 = pnand %p1018_p10, %p1012_p7 }
  0x54   :  { %1022 = shalt.err (!%p1019_p11)
}
  0x55   :  { %52 = dma.hbm_to_vmem [thread:$0]  %s1301_s2, 256, %s47_s1, [#allocation6], %s1102_s18, %s1102_s18, %s1103_s22  }
  0x56   :  { %s1108_s23 = smov [#allocation10]   ;;  %s1109_s25 = smov [#allocation13]  }
  0x57   :  { %s72_s24 = sshll.u32 %s1108_s23, 4  ;;  %s100_s26 = sshll.u32 %s1109_s25, 4  ;;  %s73_s24 = int_to_ptr.vmem [resolvable:$true] %s72_s24  ;;  %s101_s26 = int_to_ptr.vmem [resolvable:$true] %s100_s26 }
  0x58   :  { %s1023_s29 = scalar_lea.hbm %s1304_s5, 1024 }
  0x59   :  { %p1024_p12 = scmp.ne.s32.totalorder %s1304_s5, %s1023_s29  ;;  %p1027_p13 = scmp.lt.u32.totalorder %s1023_s29, %s1304_s5 }
  0x5b   :  { %p1029_p0 = pnand %p1027_p13, %p1024_p12 }
  0x5d   :  { %1032 = shalt.err (!%p1029_p0)
}
  0x5e   :  { %s1033_s2 = scalar_lea.vmem %s73_s24, 1024  ;;  %p1038_p2 = scmp.lt.s32.totalorder %s73_s24, %s73_s24 }
  0x5f   :  { %p1034_p1 = scmp.ne.s32.totalorder %s73_s24, %s1033_s2  ;;  %p1039_p3 = scmp.lt.s32.totalorder %s1033_s2, %s1033_s2 }
  0x61   :  { %p1040_p4 = por %p1039_p3, %p1038_p2 }
  0x63   :  { %p1041_p5 = pnand %p1040_p4, %p1034_p1 }
  0x65   :  { %1044 = shalt.err (!%p1041_p5)
}
  0x66   :  { %78 = dma.hbm_to_vmem [thread:$0]  %s1304_s5, 1024, %s73_s24, [#allocation9], %s1102_s18, %s1102_s18, %s1103_s22  }
  0x67   :  { %s1045_s16 = scalar_lea.hbm %s1308_s9, 2048 }
  0x68   :  { %p1046_p6 = scmp.ne.s32.totalorder %s1308_s9, %s1045_s16  ;;  %p1049_p7 = scmp.lt.u32.totalorder %s1045_s16, %s1308_s9 }
  0x6a   :  { %p1051_p8 = pnand %p1049_p7, %p1046_p6 }
  0x6c   :  { %1054 = shalt.err (!%p1051_p8)
}
  0x6d   :  { %s1055_s20 = scalar_lea.vmem %s101_s26, 2048  ;;  %p1060_p10 = scmp.lt.s32.totalorder %s101_s26, %s101_s26 }
  0x6e   :  { %p1056_p9 = scmp.ne.s32.totalorder %s101_s26, %s1055_s20  ;;  %p1061_p11 = scmp.lt.s32.totalorder %s1055_s20, %s1055_s20 }
  0x70   :  { %p1062_p12 = por %p1061_p11, %p1060_p10 }
  0x72   :  { %p1063_p13 = pnand %p1062_p12, %p1056_p9 }
  0x74   :  { %1066 = shalt.err (!%p1063_p13)
}
  0x75   :  { %106 = dma.hbm_to_vmem [thread:$0]  %s1308_s9, 2048, %s101_s26, [#allocation12], %s1102_s18, %s1102_s18, %s1103_s22  }
  0x76   :  { %1089 = dma.done.wait [#allocation3], 128  }
  0x77   :  { %1090 = vsyncadd [#allocation3], 4294967168 }
  0x78   :  { %1091 = dma.done.wait [#allocation6], 384  }
  0x79   :  { %1092 = vsyncadd [#allocation6], 4294966912 }
  0x7a   :  { %1093 = dma.done.wait [#allocation9], 1280  }
  0x7b   :  { %1094 = vsyncadd [#allocation9], 4294966016 }
  0x7c   :  { %1095 = dma.done.wait [#allocation12], 4096  }
  0x7d   :  { %1096 = vsyncadd [#allocation12], 4294963200  ;;  %v1110_v0 = vmov 0.0   ;;  %vm1111_vm0 = vmmov 0   ;;  %v861_v1 = vld [vmem:[#allocation8] sm:$0xff]   ;;  %v862_v2 = vld [vmem:[#allocation8 + $0x8] sm:$0xff]  }
  0x7e   :  { %810 = vmatprep.subr.bf16.mxu1 %v1110_v0  ;;  %814 = vmatprep.mubr.msk.bf16.mxu1 %vm1111_vm0, %v1110_v0  ;;  %v137_v3 = vld [vmem:[#allocation5] sm:$0xff]  ;;  %v865_v5 = vld [vmem:[#allocation10] sm:$0xff]   ;;  %vm155_vm1 = vcmask 261120   ;;  %v866_v7 = vld [vmem:[#allocation10 + $0x8] sm:$0xff]   ;;  %v1112_v46 = vmov 0  }
  0x7f   :  { %826 = vmatprep.subr.bf16.mxu0 %v1110_v0  ;;  %842 = vmatprep.mubr.msk.bf16.mxu0 %vm1111_vm0, %v1110_v0  ;;  %v138_v4 = vpack.c.bf16 %v137_v3, %v137_v3  ;;  %v863_v6 = vld [vmem:[#allocation7] sm:$0xff]   ;;  %v864_v8 = vld [vmem:[#allocation7 + $0x8] sm:$0xff]   ;;  %v131_v9 = vld [vmem:[#allocation2] sm:$0xff] }
  0x80   :  { %811 = vmatpush3.bf16.msra.mxu1 %v861_v1  ;;  %827 = vmatpush3.bf16.msra.mxu0 %v865_v5  ;;  %v867_v10 = vld [vmem:[#allocation10 + $0x10] sm:$0xff]   ;;  %v132_v11 = vpack.c.bf16 %v131_v9, %v131_v9  ;;  %v868_v12 = vld [vmem:[#allocation10 + $0x18] sm:$0xff]   ;;  %v869_v13 = vld [vmem:[#allocation10 + $0x20] sm:$0xff]  }
  0x81   :  { %812 = vmatprep.subr.bf16.mxu1 %v1110_v0  ;;  %828 = vmatprep.subr.bf16.mxu0 %v1110_v0  ;;  %v870_v14 = vld [vmem:[#allocation10 + $0x28] sm:$0xff]   ;;  %v871_v15 = vld [vmem:[#allocation10 + $0x30] sm:$0xff]   ;;  %v872_v16 = vld [vmem:[#allocation10 + $0x38] sm:$0xff]  }
  0x82   :  { %v873_v17 = vld [vmem:[#allocation11] ss:$8 sps:$4 sm:$0xff]   ;;  %v875_v18 = vld [vmem:[#allocation11 + $0x4] ss:$8 sps:$4 sm:$0xff]   ;;  %v878_v19 = vld [vmem:[#allocation11 + $0x14] ss:$8 sps:$4 sm:$0xff]  }
  0x83   :  { %v876_v20 = vld [vmem:[#allocation11 + $0x10] ss:$8 sps:$4 sm:$0xff]   ;;  %v881_v21 = vld [vmem:[#allocation11 + $0x24] ss:$8 sps:$4 sm:$0xff]   ;;  %v879_v22 = vld [vmem:[#allocation11 + $0x20] ss:$8 sps:$4 sm:$0xff]  }
  0x84   :  { %813 = vmatpush3.bf16.msra.mxu1 %v862_v2  ;;  %829 = vmatpush3.bf16.msra.mxu0 %v866_v7  ;;  %v884_v23 = vld [vmem:[#allocation11 + $0x34] ss:$8 sps:$4 sm:$0xff]   ;;  %v882_v24 = vld [vmem:[#allocation11 + $0x30] ss:$8 sps:$4 sm:$0xff]   ;;  %v887_v25 = vld [vmem:[#allocation11 + $0x44] ss:$8 sps:$4 sm:$0xff]   ;;  %v395_v7 = vlaneseq }
  0x85   :  { %818 = vmatprep.subr.bf16.mxu1 %v1110_v0  ;;  %830 = vmatprep.subr.bf16.mxu0 %v1110_v0  ;;  %v885_v26 = vld [vmem:[#allocation11 + $0x40] ss:$8 sps:$4 sm:$0xff]   ;;  %v890_v27 = vld [vmem:[#allocation11 + $0x54] ss:$8 sps:$4 sm:$0xff]   ;;  %v888_v28 = vld [vmem:[#allocation11 + $0x50] ss:$8 sps:$4 sm:$0xff]  }
  0x86   :  { %v893_v29 = vld [vmem:[#allocation11 + $0x64] ss:$8 sps:$4 sm:$0xff]   ;;  %v891_v30 = vld [vmem:[#allocation11 + $0x60] ss:$8 sps:$4 sm:$0xff]   ;;  %v730_v36 = vld [vmem:[%s1303_s4] ss:$0 sm:$0xff] }
  0x87   :  { %815 = vmatmul.mubr.msk.bf16.vlgmr.msra.gmra.mrb[0].mxu1 %vm155_vm1, %v138_v4  ;;  %v896_v44 = vld [vmem:[#allocation11 + $0x74] ss:$8 sps:$4 sm:$0xff]   ;;  %v894_v45 = vld [vmem:[#allocation11 + $0x70] ss:$8 sps:$4 sm:$0xff]   ;;  %v897_v47 = vld [vmem:[#allocation13 + $0x40] sm:$0xff]  }
  0x88   :  { %819 = vmatpush3.bf16.msra.mxu1 %v863_v6  ;;  %822 = vmatprep.mubr.msk.bf16.mxu1 %vm1111_vm0, %v1110_v0  ;;  %v898_v48 = vld [vmem:[#allocation13] sm:$0xff]   ;;  %v899_v49 = vld [vmem:[#allocation13 + $0x48] sm:$0xff]   ;;  %v901_v51 = vld [vmem:[#allocation13 + $0x50] sm:$0xff]  }
  0x89   :  { %820 = vmatprep.subr.bf16.mxu1 %v1110_v0  ;;  %831 = vmatpush3.bf16.msra.mxu0 %v867_v10  ;;  %v900_v50 = vld [vmem:[#allocation13 + $0x8] sm:$0xff]   ;;  %v902_v52 = vld [vmem:[#allocation13 + $0x10] sm:$0xff]   ;;  %v903_v53 = vld [vmem:[#allocation13 + $0x58] sm:$0xff]  }
  0x8a   :  { %832 = vmatprep.subr.bf16.mxu0 %v1110_v0  ;;  %v904_v54 = vld [vmem:[#allocation13 + $0x18] sm:$0xff]   ;;  %v905_v55 = vld [vmem:[#allocation13 + $0x60] sm:$0xff]   ;;  %v907_v57 = vld [vmem:[#allocation13 + $0x68] sm:$0xff]  }
  0x8b   :  { %v906_v56 = vld [vmem:[#allocation13 + $0x20] sm:$0xff]   ;;  %v908_v58 = vld [vmem:[#allocation13 + $0x28] sm:$0xff]   ;;  %v731_v59 = vld [vmem:[%s1305_s6] ss:$0 sm:$0xff] }
  0x8c   :  { %821 = vmatpush3.bf16.msra.mxu1 %v864_v8  ;;  %v909_v3 = vld [vmem:[#allocation13 + $0x70] sm:$0xff]   ;;  %v911_v5 = vld [vmem:[#allocation13 + $0x78] sm:$0xff]   ;;  %v396_v8 = vshrl.u32 %v395_v7, 7 }
  0x8d   :  { %833 = vmatpush3.bf16.msra.mxu0 %v868_v12  ;;  %485 = vmatprep.subr.bf16.mxu1 %v875_v18  ;;  %v910_v4 = vld [vmem:[#allocation13 + $0x30] sm:$0xff]   ;;  %v912_v6 = vld [vmem:[#allocation13 + $0x38] sm:$0xff]  }
  0x8e   :  { %834 = vmatprep.subr.bf16.mxu0 %v1110_v0  ;;  %v397_v9 = vsub.s32 0, %v396_v8  ;;  %v393_v10 = vld [vmem:[%s1307_s8] sm:$0x3]  ;;  %s1113_s8 = smov [#allocation14]  }
  0x8f   :  { %823 = vmatmul.mubr.msk.bf16.vlgmr.msra.gmra.mrb[4].mxu1 %vm155_vm1, %v132_v11  ;;  %v401_v11 = vsub.s32 1, %v396_v8  ;;  %s712_s27 = sshll.u32 %s1113_s8, 4  ;;  %s713_s27 = int_to_ptr.vmem [resolvable:$true] %s712_s27 }
  0x90   :  { %486 = vmatpush1.bf16.msra.mxu1 %v873_v17  ;;  %517 = vmatprep.mubr.bf16.mxu1 %v1112_v46  ;;  %v398_v12 = vrot.slane %v393_v10, %v397_v9  ;;  %s1067_s28 = scalar_lea.vmem %s713_s27, 128  ;;  %p1072_p1 = scmp.lt.s32.totalorder %s713_s27, %s713_s27 }
  0x91   :  { %835 = vmatpush3.bf16.msra.mxu0 %v869_v13  ;;  %487 = vmatprep.subr.bf16.mxu1 %v878_v19  ;;  %v402_v13 = vrot.slane %v393_v10, %v401_v11  ;;  %p1068_p0 = scmp.ne.s32.totalorder %s713_s27, %s1067_s28  ;;  %p1073_p2 = scmp.lt.s32.totalorder %s1067_s28, %s1067_s28 }
  0x92   :  { %836 = vmatprep.subr.bf16.mxu0 %v1110_v0 }
  0x93   :  { %p1074_p3 = por %p1073_p2, %p1072_p1 }
  0x94   :  { %488 = vmatpush1.bf16.msra.mxu1 %v876_v20 }
  0x95   :  { %837 = vmatpush3.bf16.msra.mxu0 %v870_v14  ;;  %489 = vmatprep.subr.bf16.mxu1 %v881_v21  ;;  %p1075_p4 = pnand %p1074_p3, %p1068_p0 }
  0x96   :  { %838 = vmatprep.subr.bf16.mxu0 %v1110_v0 }
  0x98   :  { %490 = vmatpush1.bf16.msra.mxu1 %v879_v22 }
  0x99   :  { %839 = vmatpush3.bf16.msra.mxu0 %v871_v15  ;;  %491 = vmatprep.subr.bf16.mxu1 %v884_v23 }
  0x9a   :  { %840 = vmatprep.subr.bf16.mxu0 %v1110_v0 }
  0x9c   :  { %492 = vmatpush1.bf16.msra.mxu1 %v882_v24 }
  0x9d   :  { %841 = vmatpush3.bf16.msra.mxu0 %v872_v16  ;;  %493 = vmatprep.subr.bf16.mxu1 %v887_v25  ;;  %v756_v25 = vld [vmem:[%s1309_s10] ss:$0 sm:$0xff] }
  0x9e   :  { %788 = vmatprep.subr.bf16.mxu0 %v897_v47 }
  0xa0   :  { %494 = vmatpush1.bf16.msra.mxu1 %v885_v26 }
  0xa1   :  { %495 = vmatprep.subr.bf16.mxu1 %v890_v27 }
  0xa4   :  { %496 = vmatpush1.bf16.msra.mxu1 %v888_v28 }
  0xa5   :  { %497 = vmatprep.subr.bf16.mxu1 %v893_v29 }
  0xa8   :  { %498 = vmatpush1.bf16.msra.mxu1 %v891_v30 }
  0xa9   :  { %499 = vmatprep.subr.bf16.mxu1 %v896_v44 }
  0xac   :  { %500 = vmatpush1.bf16.msra.mxu1 %v894_v45 }
 0x15a   :  { %v193_v31 = vpop.f32.mrb[0].mxu1 }
 0x15b   :  { %v816_v32 = vpop.f32.mrb[1].mxu1 }
 0x15c   :  { %v196_v33 = vpop.f32.mrb[2].mxu1 }
 0x15d   :  { %v817_v34 = vpop.f32.mrb[3].mxu1 }
 0x162   :  { %v248_v35 = vpop.f32.mrb[4].mxu1 }
 0x163   :  { %v249_v37 = vadd.f32 %v248_v35, %v193_v31  ;;  %v824_v38 = vpop.f32.mrb[5].mxu1 }
 0x164   :  { %v251_v39 = vpop.f32.mrb[6].mxu1 }
 0x165   :  { %v261_v40 = vadd.f32 %v730_v36, %v249_v37  ;;  %v825_v41 = vpop.f32.mrb[7].mxu1 }
 0x167   :  { %v262_v42 = vmax.f32 %v261_v40, 0.0 }
 0x169   :  { %v263_v43 = vpack.c.bf16 %v262_v42, %v262_v42 }
 0x16b   :  { %843 = vmatmul.mubr.bf16.vlgmr.msra.gmra.mrb[0].mxu0 %v263_v43 }
 0x16c   :  { %789 = vmatpush3.bf16.msra.mxu0 %v898_v48 }
 0x16d   :  { %790 = vmatprep.subr.bf16.mxu0 %v899_v49 }
 0x170   :  { %791 = vmatpush3.bf16.msra.mxu0 %v900_v50 }
 0x171   :  { %792 = vmatprep.subr.bf16.mxu0 %v901_v51 }
 0x174   :  { %793 = vmatpush3.bf16.msra.mxu0 %v902_v52 }
 0x175   :  { %794 = vmatprep.subr.bf16.mxu0 %v903_v53 }
 0x178   :  { %795 = vmatpush3.bf16.msra.mxu0 %v904_v54 }
 0x179   :  { %796 = vmatprep.subr.bf16.mxu0 %v905_v55 }
 0x17c   :  { %797 = vmatpush3.bf16.msra.mxu0 %v906_v56 }
 0x17d   :  { %798 = vmatprep.subr.bf16.mxu0 %v907_v57 }
 0x180   :  { %799 = vmatpush3.bf16.msra.mxu0 %v908_v58 }
 0x181   :  { %800 = vmatprep.subr.bf16.mxu0 %v909_v3 }
 0x184   :  { %801 = vmatpush3.bf16.msra.mxu0 %v910_v4 }
 0x185   :  { %802 = vmatprep.subr.bf16.mxu0 %v911_v5 }
 0x188   :  { %803 = vmatpush3.bf16.msra.mxu0 %v912_v6 }
 0x23e   :  { %v369_v60 = vpop.f32.mrb[0].mxu0 }
 0x23f   :  { %v370_v61 = vadd.f32 %v731_v59, %v369_v60  ;;  %v844_v62 = vpop.f32.mrb[1].mxu0 }
 0x240   :  { %v372_v63 = vpop.f32.mrb[2].mxu0 }
 0x241   :  { %v375_v0 = vmax.f32 %v370_v61, 0.0  ;;  %v845_v1 = vpop.f32.mrb[3].mxu0 }
 0x243   :  { %v376_v2 = vpack.c.bf16 %v375_v0, %v375_v0 }
 0x245   :  { %518 = vmatmul.mubr.bf16.vlgmr.msra.gmra.mrb[8].mxu1 %v376_v2 }
 0x318   :  { %v519_v14 = vpop.f32.mrb[8].mxu1 }
 0x319   :  { %v520_v15 = vadd.f32 %v519_v14, %v398_v12  ;;  %v521_v16 = vpop.f32.mrb[9].mxu1 }
 0x31a   :  { %v522_v17 = vadd.f32 %v521_v16, %v402_v13  ;;  %v523_v18 = vpop.f32.mrb[10].mxu1 }
 0x31b   :  { %v526_v19 = vmax.f32 %v520_v15, 0.0  ;;  %v524_v20 = vpop.f32.mrb[11].mxu1 }
 0x31c   :  { %v527_v21 = vmax.f32 %v522_v17, 0.0 }
 0x31d   :  { %v528_v23 = vpack.c.bf16 %v526_v19, %v526_v19 }
 0x31e   :  { %v529_v22 = vpack.c.bf16 %v527_v21, %v527_v21 }
 0x320   :  { %697 = vmatprep.mubr.bf16.mxu0 %v529_v22 }
 0x321   :  { %698 = vmatmul.mubr.bf16.vlgmr.msra.gmra.mrb[4].mxu0 %v528_v23 }
 0x3f4   :  { %v804_v24 = vpop.f32.mrb[4].mxu0 }
 0x3f5   :  { %v805_v26 = vpop.f32.mrb[5].mxu0 }
 0x3f6   :  { %v806_v27 = vadd.f32 %v805_v26, %v804_v24  ;;  %v807_v28 = vpop.f32.mrb[6].mxu0 }
 0x3f7   :  { %v808_v29 = vpop.f32.mrb[7].mxu0 }
 0x3f8   :  { %v700_v30 = vadd.f32 %v806_v27, %v756_v25 }
 0x3fa   :  { %705 = vst [vmem:[#allocation14] sm:$0xff] %v700_v30 }
 0x3fb   :  { %1078 = shalt.err (!%p1075_p4)
}
 0x3fc   :  { %s1079_s10 = scalar_lea.hbm %s1310_s11, 128 }
 0x3fd   :  { %p1080_p5 = scmp.ne.s32.totalorder %s1310_s11, %s1079_s10  ;;  %p1083_p6 = scmp.lt.u32.totalorder %s1079_s10, %s1310_s11 }
 0x3ff   :  { %p1085_p7 = pnand %p1083_p6, %p1080_p5 }
 0x401   :  { %1088 = shalt.err (!%p1085_p7)
}
 0x402   :  { %715 = dma.vmem_to_hbm [thread:$0]  %s713_s27, 128, %s1310_s11, [#allocation4]  }
 0x403   :  { %1097 = dma.done.wait [#allocation4], 128  }
 0x404   :  { %1098 = vsyncadd [#allocation4], 4294967168 }
 0x405   :  { %719 = vsyncpa [#allocation3], 1 }
 0x406   :  { %720 = vsyncpa [#allocation6], 1 }
 0x407   :  { %721 = vsyncpa [#allocation9], 1 }
 0x408   :  { %722 = vsyncpa [#allocation12], 1 }
 0x409   :  { %723 = vsyncpa [#allocation4], 1 }

</bundles_post_ra>
